<compile_context>
chip_gen: v6e
topology: v6e:2x2x1
jax: 0.10.0
libtpu: 0.0.40
codegen_flags: <defaults>
</compile_context>

<pallas_src>
import functools
import math

import jax
import jax.numpy as jnp
from jax.experimental import pallas as pl
from jax.experimental.pallas import tpu as pltpu


def gaussian_taps_1d(kernel_size: int, sigma: float) -> tuple:
    """Normalized 1-D Gaussian taps as Python floats; outer(taps, taps) == module's 2-D kernel."""
    mean = (kernel_size - 1) / 2.0
    g = [math.exp(-(((i - mean) / sigma) ** 2) / 2.0) for i in range(kernel_size)]
    s = sum(g)
    return tuple(gi / s for gi in g)


def make_gaussian_weight(channels: int, kernel_size: int, sigma: float) -> jnp.ndarray:
    """Replicates GaussianSmoothing.__init__ weight construction (dim=2). Returns (C, K, K)."""
    ks = [kernel_size, kernel_size]
    sg = [sigma, sigma]
    grids = jnp.meshgrid(*[jnp.arange(s, dtype=jnp.float32) for s in ks], indexing="ij")
    kernel = jnp.ones((), dtype=jnp.float32)
    for size, std, mgrid in zip(ks, sg, grids):
        mean = (size - 1) / 2.0
        kernel = kernel * (
            1.0 / (std * math.sqrt(2.0 * math.pi))
            * jnp.exp(-(((mgrid - mean) / std) ** 2) / 2.0)
        )
    kernel = kernel / jnp.sum(kernel)                              # (K, K)
    kernel = jnp.broadcast_to(kernel, (channels,) + kernel.shape)  # (C, K, K)
    return kernel


def _gauss_sep_kernel(x_ref, o_ref, *, taps, H_out: int, W_out: int):
    # x_ref: VMEM (N, C, H, W); o_ref: VMEM (N, C, H_out, W_out).
    # taps: tuple of Python floats (compile-time constants, shared by every channel).
    K = len(taps)
    x = x_ref[...].astype(jnp.float32)                 # f32 accumulate (no-op for f32 input)

    # Vertical 1-D pass (sublane-axis shifts), full lane width: (N,C,H,W) -> (N,C,H_out,W)
    v = taps[0] * x[:, :, 0:H_out, :]
    for kh in range(1, K):                             # K small & static -> unrolled
        v = v + taps[kh] * x[:, :, kh:kh + H_out, :]

    # Horizontal 1-D pass (lane-axis shifts): (N,C,H_out,W) -> (N,C,H_out,W_out)
    h = taps[0] * v[:, :, :, 0:W_out]
    for kw in range(1, K):
        h = h + taps[kw] * v[:, :, :, kw:kw + W_out]

    o_ref[...] = h.astype(o_ref.dtype)


def gaussian_smoothing(x: jnp.ndarray, kernel_size: int, sigma: float) -> jnp.ndarray:
    """x: (N, C, H, W). Returns the depthwise valid Gaussian conv, (N, C, H-K+1, W-K+1)."""
    N, C, H, W = x.shape
    K = kernel_size
    H_out = H - K + 1
    W_out = W - K + 1
    taps = gaussian_taps_1d(K, sigma)                  # baked compile-time constants

    kernel = functools.partial(_gauss_sep_kernel, taps=taps, H_out=H_out, W_out=W_out)

    # Single grid step: whole tensor resident in VMEM (8 KiB in / 6.1 KiB out at these
    # shapes) -> one DMA each way, no per-step pipeline overhead.
    return pl.pallas_call(
        kernel,
        out_shape=jax.ShapeDtypeStruct((N, C, H_out, W_out), x.dtype),
        in_specs=[pl.BlockSpec(memory_space=pltpu.MemorySpace.VMEM)],
        out_specs=pl.BlockSpec(memory_space=pltpu.MemorySpace.VMEM),
    )(x)


def gaussian_smoothing_ref(x: jnp.ndarray, weight: jnp.ndarray) -> jnp.ndarray:
    """Pure-JAX reference: depthwise valid conv (groups = C), matches F.conv2d."""
    C, K, _ = weight.shape
    w4 = weight.reshape(C, 1, K, K)  # (O, I/groups, K, K)
    return jax.lax.conv_general_dilated(
        x, w4,
        window_strides=(1, 1), padding="VALID",
        dimension_numbers=("NCHW", "OIHW", "NCHW"),
        feature_group_count=C,
    )


if __name__ == "__main__":
    # Module config: channels=4, kernel_size=3, sigma=1.0, dim=2
    N, C, H, W = 2, 4, 16, 16
    K, SIGMA = 3, 1.0

    key = jax.random.PRNGKey(0)
    x = jax.random.normal(key, (N, C, H, W), dtype=jnp.float32)

    out = gaussian_smoothing(x, K, SIGMA)
    out = jax.block_until_ready(out)

    weight = make_gaussian_weight(C, K, SIGMA)          # (C, K, K), exactly as the module builds it
    ref = gaussian_smoothing_ref(x, weight)

    assert out.shape == (N, C, H - K + 1, W - K + 1), out.shape
    # Separable taps reproduce the module's 2-D kernel exactly (up to fp rounding).
    taps_arr = jnp.array(gaussian_taps_1d(K, SIGMA), dtype=jnp.float32)
    assert jnp.allclose(jnp.outer(taps_arr, taps_arr), weight[0], atol=1e-6, rtol=1e-5)
    assert jnp.allclose(out, ref, atol=1e-5, rtol=1e-5), "mismatch vs reference conv"

    print("KERNEL_OK")
</pallas_src>

<mosaic_0001>
module attributes {stable_mosaic.version = 11 : i64} {
  func.func @_gauss_sep_kernel(%arg0: memref<2x4x16x16xf32, #tpu.memory_space<vmem>>, %arg1: memref<2x4x14x14xf32, #tpu.memory_space<vmem>>) attributes {dimension_semantics = [], scalar_prefetch = 0 : i64, scratch_operands = 0 : i64, tpu.core_type = #tpu.core_type<tc>} {
    %c0 = arith.constant 0 : index
    %c0_0 = arith.constant 0 : index
    %c0_1 = arith.constant 0 : index
    %c0_2 = arith.constant 0 : index
    %0 = vector.load %arg0[%c0, %c0_0, %c0_1, %c0_2] : memref<2x4x16x16xf32, #tpu.memory_space<vmem>>, vector<2x4x16x16xf32>
    %1 = vector.extract_strided_slice %0 {offsets = [0, 0, 0, 0], sizes = [2, 4, 14, 16], strides = [1, 1, 1, 1]} : vector<2x4x16x16xf32> to vector<2x4x14x16xf32>
    %cst = arith.constant 0.274068624 : f32
    %2 = vector.broadcast %cst : f32 to vector<2x4x14x16xf32>
    %3 = arith.mulf %2, %1 : vector<2x4x14x16xf32>
    %4 = vector.extract_strided_slice %0 {offsets = [0, 0, 1, 0], sizes = [2, 4, 14, 16], strides = [1, 1, 1, 1]} : vector<2x4x16x16xf32> to vector<2x4x14x16xf32>
    %cst_3 = arith.constant 0.451862752 : f32
    %5 = vector.broadcast %cst_3 : f32 to vector<2x4x14x16xf32>
    %6 = arith.mulf %5, %4 : vector<2x4x14x16xf32>
    %7 = arith.addf %3, %6 : vector<2x4x14x16xf32>
    %8 = vector.extract_strided_slice %0 {offsets = [0, 0, 2, 0], sizes = [2, 4, 14, 16], strides = [1, 1, 1, 1]} : vector<2x4x16x16xf32> to vector<2x4x14x16xf32>
    %cst_4 = arith.constant 0.274068624 : f32
    %9 = vector.broadcast %cst_4 : f32 to vector<2x4x14x16xf32>
    %10 = arith.mulf %9, %8 : vector<2x4x14x16xf32>
    %11 = arith.addf %7, %10 : vector<2x4x14x16xf32>
    %12 = vector.extract_strided_slice %11 {offsets = [0, 0, 0, 0], sizes = [2, 4, 14, 14], strides = [1, 1, 1, 1]} : vector<2x4x14x16xf32> to vector<2x4x14x14xf32>
    %cst_5 = arith.constant 0.274068624 : f32
    %13 = vector.broadcast %cst_5 : f32 to vector<2x4x14x14xf32>
    %14 = arith.mulf %13, %12 : vector<2x4x14x14xf32>
    %15 = vector.extract_strided_slice %11 {offsets = [0, 0, 0, 1], sizes = [2, 4, 14, 14], strides = [1, 1, 1, 1]} : vector<2x4x14x16xf32> to vector<2x4x14x14xf32>
    %cst_6 = arith.constant 0.451862752 : f32
    %16 = vector.broadcast %cst_6 : f32 to vector<2x4x14x14xf32>
    %17 = arith.mulf %16, %15 : vector<2x4x14x14xf32>
    %18 = arith.addf %14, %17 : vector<2x4x14x14xf32>
    %19 = vector.extract_strided_slice %11 {offsets = [0, 0, 0, 2], sizes = [2, 4, 14, 14], strides = [1, 1, 1, 1]} : vector<2x4x14x16xf32> to vector<2x4x14x14xf32>
    %cst_7 = arith.constant 0.274068624 : f32
    %20 = vector.broadcast %cst_7 : f32 to vector<2x4x14x14xf32>
    %21 = arith.mulf %20, %19 : vector<2x4x14x14xf32>
    %22 = arith.addf %18, %21 : vector<2x4x14x14xf32>
    %c0_8 = arith.constant 0 : index
    %c0_9 = arith.constant 0 : index
    %c0_10 = arith.constant 0 : index
    %c0_11 = arith.constant 0 : index
    %23 = vector.load %arg1[%c0_8, %c0_9, %c0_10, %c0_11] : memref<2x4x14x14xf32, #tpu.memory_space<vmem>>, vector<2x4x14x14xf32>
    tpu.vector_store %arg1[%c0_8, %c0_9, %c0_10, %c0_11], %22 {strides = array<i32>} : memref<2x4x14x14xf32, #tpu.memory_space<vmem>>, vector<2x4x14x14xf32>,
    return
  }
}

</mosaic_0001>

<bundles_post_ra>
// kernel: tpu_custom_call.1
= control target key start
LH: loop header
LB: loop body
LE: loop exit
PB: predicated region body
PF: predicated region fallthrough
CT: control target
= control target key end

     0   :  { %6 = vsyncpa [#allocation3], 0  ;;  %s458_s6 = smov [#allocation2]   ;;  %s659_s0 = inlined_call_operand.hbm [shape: f32[2,4,16,16], index: 0, kind: input, shape index: {}]   ;;  %s660_s1 = inlined_call_operand.vmem [shape: f32[2,4,14,14], index: 1, kind: output, shape index: {}]  }
   0x1   :  { %s12_s7 = sshll.u32 %s458_s6, 4  ;;  %s13_s7 = int_to_ptr.vmem [resolvable:$true] %s12_s7 }
   0x2   :  { %s444_s8 = scalar_lea.vmem %s13_s7, 2048  ;;  %p449_p1 = scmp.lt.s32.totalorder %s13_s7, %s13_s7 }
   0x3   :  { %p445_p0 = scmp.ne.s32.totalorder %s13_s7, %s444_s8  ;;  %p450_p2 = scmp.lt.s32.totalorder %s444_s8, %s444_s8 }
   0x5   :  { %p451_p3 = por %p450_p2, %p449_p1 }
   0x7   :  { %p452_p4 = pnand %p451_p3, %p445_p0 }
   0x9   :  { %455 = shalt.err (!%p452_p4)
}
   0xa   :  { %s459_s9 = smov 128   ;;  %s460_s10 = smov 8  }
   0xb   :  { %18 = dma.hbm_to_vmem [thread:$0]  %s659_s0, 2048, %s13_s7, [#allocation3], %s459_s9, %s459_s9, %s460_s10  }
   0xc   :  { %456 = dma.done.wait [#allocation3], 2048  }
   0xd   :  { %457 = vsyncadd [#allocation3], 4294965248  ;;  %v25_v0 = vld [vmem:[#allocation2 + $0x18] sm:$0xff]  ;;  %v23_v1 = vld [vmem:[#allocation2 + $0x8] sm:$0xff]  ;;  %vm86_vm0 = vcmask 1046528   ;;  %vm159_vm1 = vcmask 1045504  }
   0xe   :  { %v27_v2 = vld [vmem:[#allocation2 + $0x28] sm:$0xff]  ;;  %v476_v3 = vmul.f32 0.27406862, %v25_v0  ;;  %v478_v4 = vmul.f32 0.45186275, %v25_v0  ;;  %v22_v12 = vld [vmem:[#allocation2] sm:$0xff] }
   0xf   :  { %v39_v5 = vmul.f32 0.27406862, %v23_v1  ;;  %v55_v6 = vmul.f32 0.45186275, %v23_v1  ;;  %v43_v7 = vmul.f32 0.27406862, %v27_v2 }
  0x10   :  { %v59_v8 = vmul.f32 0.45186275, %v27_v2  ;;  %v91_v9 = vrot.slane %v478_v4, 1  ;;  %v164_v10 = vrot.slane %v476_v3, 2  ;;  %v29_v13 = vld [vmem:[#allocation2 + $0x38] sm:$0xff]  ;;  %v26_v18 = vld [vmem:[#allocation2 + $0x20] sm:$0xff] }
  0x11   :  { %v161_v11 = vrot.slane %v39_v5, 2  ;;  %v88_v14 = vrot.slane %v55_v6, 1  ;;  %v167_v16 = vrot.slane %v43_v7, 2  ;;  %v38_v17 = vmul.f32 0.27406862, %v22_v12  ;;  %v31_v35 = vld [vmem:[#allocation2 + $0x48] sm:$0xff] }
  0x12   :  { %v94_v15 = vrot.slane %v59_v8, 1  ;;  %v130_v19 = vadd.f32 %v91_v9, %v476_v3  ;;  %v54_v20 = vmul.f32 0.45186275, %v22_v12  ;;  %v45_v21 = vmul.f32 0.27406862, %v29_v13  ;;  %v28_v40 = vld [vmem:[#allocation2 + $0x30] sm:$0xff] }
  0x13   :  { %v61_v22 = vmul.f32 0.45186275, %v29_v13  ;;  %v128_v23 = vadd.f32 %v88_v14, %v39_v5  ;;  %v160_v25 = vrot.slane %v38_v17, 2  ;;  %v42_v26 = vmul.f32 0.27406862, %v26_v18  ;;  %s461_s0 = smov 127  }
  0x14   :  { %v132_v24 = vadd.f32 %v94_v15, %v43_v7  ;;  %v487_v27 = vadd.f32 %v164_v10, %v130_v19  ;;  %v87_v28 = vrot.slane %v54_v20, 1  ;;  %v170_v30 = vrot.slane %v45_v21, 2  ;;  %v24_v53 = vld [vmem:[#allocation2 + $0x10] sm:$0xff]  ;;  %v30_v58 = vld [vmem:[#allocation2 + $0x40] sm:$0xff]  ;;  %s462_s13 = smov 126  }
  0x15   :  { %v97_v29 = vrot.slane %v61_v22, 1  ;;  %v489_v31 = vadd.f32 %v161_v11, %v128_v23  ;;  %v162_v33 = vsel %vm159_vm1, %v160_v25, %v161_v11  ;;  %v58_v34 = vmul.f32 0.45186275, %v26_v18  ;;  %v33_v11 = vld [vmem:[#allocation2 + $0x58] sm:$0xff]  ;;  %v35_v25 = vld [vmem:[#allocation2 + $0x68] sm:$0xff] }
  0x16   :  { %v491_v32 = vadd.f32 %v167_v16, %v132_v24  ;;  %v235_v36 = vmul.f32 0.45186275, %v487_v27  ;;  %v89_v37 = vsel %vm86_vm0, %v87_v28, %v88_v14  ;;  %v166_v39 = vrot.slane %v42_v26, 2  ;;  %v32_v24 = vld [vmem:[#allocation2 + $0x50] sm:$0xff] }
  0x17   :  { %v134_v38 = vadd.f32 %v97_v29, %v45_v21  ;;  %v233_v41 = vmul.f32 0.45186275, %v489_v31  ;;  %v127_v43 = vadd.f32 %v89_v37, %v38_v17  ;;  %v93_v44 = vrot.slane %v58_v34, 1 }
  0x18   :  { %v237_v42 = vmul.f32 0.45186275, %v491_v32  ;;  %270 = vrot.lane.b32.xlu1 %v235_v36, %s461_s0  ;;  %v168_v46 = vsel %vm159_vm1, %v166_v39, %v167_v16  ;;  %v47_v47 = vmul.f32 0.27406862, %v31_v35  ;;  %v63_v48 = vmul.f32 0.45186275, %v31_v35 }
  0x19   :  { %v499_v45 = vadd.f32 %v170_v30, %v134_v38  ;;  %266 = vrot.lane.b32.xlu0 %v233_v41, %s461_s0  ;;  %v503_v49 = vadd.f32 %v162_v33, %v127_v43  ;;  %v95_v50 = vsel %vm86_vm0, %v93_v44, %v94_v15  ;;  %v44_v51 = vmul.f32 0.27406862, %v28_v40  ;;  %v34_v35 = vld [vmem:[#allocation2 + $0x60] sm:$0xff] }
  0x1a   :  { %v60_v52 = vmul.f32 0.45186275, %v28_v40  ;;  %v131_v55 = vadd.f32 %v95_v50, %v42_v26  ;;  %v100_v56 = vrot.slane %v63_v48, 1  ;;  %v173_v57 = vrot.slane %v47_v47, 2 }
  0x1b   :  { %v239_v54 = vmul.f32 0.45186275, %v499_v45  ;;  %v232_v59 = vmul.f32 0.45186275, %v503_v49  ;;  %v169_v61 = vrot.slane %v44_v51, 2  ;;  %vm410_vm2 = vcmask 111616  }
  0x1c   :  { %v96_v60 = vrot.slane %v60_v52, 1  ;;  %v40_v62 = vmul.f32 0.27406862, %v24_v53  ;;  %274 = vrot.lane.b32.xlu1 %v237_v42, %s461_s0  ;;  %v509_v63 = vadd.f32 %v168_v46, %v131_v55  ;;  %v136_v0 = vadd.f32 %v100_v56, %v47_v47  ;;  %v37_v47 = vld [vmem:[#allocation2 + $0x78] sm:$0xff] }
  0x1d   :  { %v56_v1 = vmul.f32 0.45186275, %v24_v53  ;;  %v46_v2 = vmul.f32 0.27406862, %v30_v58  ;;  %264 = vrot.lane.b32.xlu0 %v232_v59, %s461_s0  ;;  %v171_v6 = vsel %vm159_vm1, %v169_v61, %v170_v30  ;;  %v62_v8 = vmul.f32 0.45186275, %v30_v58 }
  0x1e   :  { %v98_v5 = vsel %vm86_vm0, %v96_v60, %v97_v29  ;;  %v163_v7 = vrot.slane %v40_v62, 2  ;;  %v236_v12 = vmul.f32 0.45186275, %v509_v63  ;;  %v515_v13 = vadd.f32 %v173_v57, %v136_v0 }
  0x1f   :  { %v133_v14 = vadd.f32 %v98_v5, %v44_v51  ;;  %v90_v15 = vrot.slane %v56_v1, 1  ;;  %v99_v17 = vrot.slane %v62_v8, 1  ;;  %v172_v18 = vrot.slane %v46_v2, 2 }
  0x20   :  { %v165_v16 = vsel %vm159_vm1, %v163_v7, %v164_v10  ;;  %v49_v19 = vmul.f32 0.27406862, %v33_v11  ;;  %278 = vrot.lane.b32.xlu1 %v239_v54, %s461_s0  ;;  %v241_v20 = vmul.f32 0.45186275, %v515_v13  ;;  %v65_v23 = vmul.f32 0.45186275, %v33_v11 }
  0x21   :  { %v522_v21 = vadd.f32 %v171_v6, %v133_v14  ;;  %v92_v22 = vsel %vm86_vm0, %v90_v15, %v91_v9  ;;  %272 = vrot.lane.b32.xlu0 %v236_v12, %s461_s0  ;;  %v101_v10 = vsel %vm86_vm0, %v99_v17, %v100_v56  ;;  %v174_v26 = vsel %vm159_vm1, %v172_v18, %v173_v57  ;;  %v36_v57 = vld [vmem:[#allocation2 + $0x70] sm:$0xff] }
  0x22   :  { %v129_v3 = vadd.f32 %v92_v22, %v40_v62  ;;  %v176_v28 = vrot.slane %v49_v19, 2  ;;  %v135_v30 = vadd.f32 %v101_v10, %v46_v2  ;;  %v103_v33 = vrot.slane %v65_v23, 1 }
  0x23   :  { %v238_v29 = vmul.f32 0.45186275, %v522_v21  ;;  %v48_v34 = vmul.f32 0.27406862, %v32_v24  ;;  %v64_v9 = vmul.f32 0.45186275, %v32_v24 }
  0x24   :  { %v531_v4 = vadd.f32 %v165_v16, %v129_v3  ;;  %v51_v36 = vmul.f32 0.27406862, %v35_v25  ;;  %v67_v37 = vmul.f32 0.45186275, %v35_v25  ;;  %282 = vrot.lane.b32.xlu1 %v241_v20, %s461_s0  ;;  %v534_v38 = vadd.f32 %v174_v26, %v135_v30 }
  0x25   :  { %v138_v39 = vadd.f32 %v103_v33, %v49_v19  ;;  %v175_v40 = vrot.slane %v48_v34, 2  ;;  %v50_v41 = vmul.f32 0.27406862, %v34_v35  ;;  %276 = vrot.lane.b32.xlu0 %v238_v29, %s461_s0  ;;  %v102_v43 = vrot.slane %v64_v9, 1 }
  0x26   :  { %v234_v42 = vmul.f32 0.45186275, %v531_v4  ;;  %v106_v44 = vrot.slane %v67_v37, 1  ;;  %v179_v46 = vrot.slane %v51_v36, 2  ;;  %v240_v48 = vmul.f32 0.45186275, %v534_v38 }
  0x27   :  { %v211_v50 = vadd.f32 %v176_v28, %v138_v39  ;;  %v177_v51 = vsel %vm159_vm1, %v175_v40, %v176_v28  ;;  %v66_v52 = vmul.f32 0.45186275, %v34_v35  ;;  %v104_v53 = vsel %vm86_vm0, %v102_v43, %v103_v33 }
  0x28   :  { %v140_v54 = vadd.f32 %v106_v44, %v51_v36  ;;  %v178_v55 = vrot.slane %v50_v41, 2  ;;  %v53_v56 = vmul.f32 0.27406862, %v37_v47  ;;  %268 = vrot.lane.b32.xlu1 %v234_v42, %s461_s0  ;;  %v137_v59 = vadd.f32 %v104_v53, %v48_v34 }
  0x29   :  { %v243_v58 = vmul.f32 0.45186275, %v211_v50  ;;  %v105_v60 = vrot.slane %v66_v52, 1  ;;  %v69_v61 = vmul.f32 0.45186275, %v37_v47  ;;  %280 = vrot.lane.b32.xlu0 %v240_v48, %s461_s0  ;;  %vm408_vm3 = vcmask 113664  }
  0x2a   :  { %v213_v62 = vadd.f32 %v179_v46, %v140_v54  ;;  %v180_v0 = vsel %vm159_vm1, %v178_v55, %v179_v46  ;;  %v182_v1 = vrot.slane %v53_v56, 2  ;;  %v52_v2 = vmul.f32 0.27406862, %v36_v57 }
  0x2b   :  { %v210_v5 = vadd.f32 %v177_v51, %v137_v59  ;;  %v107_v6 = vsel %vm86_vm0, %v105_v60, %v106_v44  ;;  %v109_v7 = vrot.slane %v69_v61, 1  ;;  %v68_v8 = vmul.f32 0.45186275, %v36_v57 }
  0x2c   :  { %v139_v11 = vadd.f32 %v107_v6, %v50_v41  ;;  %v181_v12 = vrot.slane %v52_v2, 2  ;;  %286 = vrot.lane.b32.xlu1 %v243_v58, %s461_s0  ;;  %v245_v15 = vmul.f32 0.45186275, %v213_v62  ;;  %v217_v26 = vmul.f32 0.27406862, %v489_v31 }
  0x2d   :  { %v242_v14 = vmul.f32 0.45186275, %v210_v5  ;;  %v142_v16 = vadd.f32 %v109_v7, %v53_v56  ;;  %v108_v17 = vrot.slane %v68_v8, 1  ;;  %v216_v28 = vmul.f32 0.27406862, %v503_v49 }
  0x2e   :  { %v212_v18 = vadd.f32 %v180_v0, %v139_v11  ;;  %v183_v22 = vsel %vm159_vm1, %v181_v12, %v182_v1  ;;  %v219_v29 = vmul.f32 0.27406862, %v487_v27  ;;  %v218_v30 = vmul.f32 0.27406862, %v531_v4 }
  0x2f   :  { %284 = vrot.lane.b32.xlu0 %v242_v14, %s461_s0  ;;  %v215_v19 = vadd.f32 %v182_v1, %v142_v16  ;;  %v110_v20 = vsel %vm86_vm0, %v108_v17, %v109_v7  ;;  %v221_v33 = vmul.f32 0.27406862, %v491_v32  ;;  %v220_v34 = vmul.f32 0.27406862, %v509_v63 }
  0x30   :  { %v244_v23 = vmul.f32 0.45186275, %v212_v18  ;;  %v141_v24 = vadd.f32 %v110_v20, %v52_v2  ;;  %290 = vrot.lane.b32.xlu1 %v245_v15, %s461_s0  ;;  %v223_v31 = vmul.f32 0.27406862, %v499_v45  ;;  %v222_v35 = vmul.f32 0.27406862, %v522_v21 }
  0x31   :  { %v247_v25 = vmul.f32 0.45186275, %v215_v19  ;;  %v562_v49 = vmul.f32 0.27406862, %v515_v13  ;;  %v565_v27 = vmul.f32 0.27406862, %v534_v38 }
  0x32   :  { %v214_v3 = vadd.f32 %v183_v22, %v141_v24  ;;  %v568_v32 = vmul.f32 0.27406862, %v211_v50  ;;  %v571_v63 = vmul.f32 0.27406862, %v210_v5  ;;  %v574_v45 = vmul.f32 0.27406862, %v213_v62 }
  0x33   :  { %288 = vrot.lane.b32.xlu0 %v244_v23, %s461_s0  ;;  %v577_v13 = vmul.f32 0.27406862, %v212_v18  ;;  %v580_v21 = vmul.f32 0.27406862, %v215_v19 }
  0x34   :  { %v246_v10 = vmul.f32 0.45186275, %v214_v3  ;;  %294 = vrot.lane.b32.xlu1 %v247_v25, %s461_s0  ;;  %v583_v4 = vmul.f32 0.27406862, %v214_v3 }
  0x37   :  { %292 = vrot.lane.b32.xlu0 %v246_v10, %s461_s0 }
  0x38   :  { %346 = vrot.lane.b32.xlu1 %v217_v26, %s462_s13 }
  0x3b   :  { %344 = vrot.lane.b32.xlu0 %v216_v28, %s462_s13 }
  0x3c   :  { %350 = vrot.lane.b32.xlu1 %v219_v29, %s462_s13 }
  0x3f   :  { %348 = vrot.lane.b32.xlu0 %v218_v30, %s462_s13 }
  0x40   :  { %354 = vrot.lane.b32.xlu1 %v221_v33, %s462_s13 }
  0x43   :  { %352 = vrot.lane.b32.xlu0 %v220_v34, %s462_s13 }
  0x44   :  { %358 = vrot.lane.b32.xlu1 %v223_v31, %s462_s13 }
  0x47   :  { %356 = vrot.lane.b32.xlu0 %v222_v35, %s462_s13 }
  0x48   :  { %362 = vrot.lane.b32.xlu1 %v562_v49, %s462_s13 }
  0x4b   :  { %360 = vrot.lane.b32.xlu0 %v565_v27, %s462_s13 }
  0x4c   :  { %366 = vrot.lane.b32.xlu1 %v568_v32, %s462_s13 }
  0x4f   :  { %364 = vrot.lane.b32.xlu0 %v571_v63, %s462_s13 }
  0x50   :  { %370 = vrot.lane.b32.xlu1 %v574_v45, %s462_s13 }
  0x53   :  { %368 = vrot.lane.b32.xlu0 %v577_v13, %s462_s13 }
  0x54   :  { %374 = vrot.lane.b32.xlu1 %v580_v21, %s462_s13 }
  0x57   :  { %372 = vrot.lane.b32.xlu0 %v583_v4, %s462_s13 }
  0x8a   :  { %v271_v9 = vpop.permute.xlu1 %270 }
  0x8b   :  { %v267_v36 = vpop.permute.xlu0 %266  ;;  %v315_v58 = vadd.f32 %v271_v9, %v219_v29 }
  0x8c   :  { %v313_v53 = vadd.f32 %v267_v36, %v217_v26 }
  0x8e   :  { %v275_v37 = vpop.permute.xlu1 %274 }
  0x8f   :  { %v265_v38 = vpop.permute.xlu0 %264  ;;  %v317_v1 = vadd.f32 %v275_v37, %v221_v33 }
  0x90   :  { %v312_v55 = vadd.f32 %v265_v38, %v216_v28 }
  0x92   :  { %v279_v39 = vpop.permute.xlu1 %278 }
  0x93   :  { %v273_v40 = vpop.permute.xlu0 %272  ;;  %v319_v11 = vadd.f32 %v279_v39, %v223_v31 }
  0x94   :  { %v316_v6 = vadd.f32 %v273_v40, %v220_v34 }
  0x96   :  { %v283_v41 = vpop.permute.xlu1 %282 }
  0x97   :  { %v277_v42 = vpop.permute.xlu0 %276  ;;  %v321_v18 = vadd.f32 %v283_v41, %v562_v49 }
  0x98   :  { %v318_v15 = vadd.f32 %v277_v42, %v222_v35 }
  0x9a   :  { %v269_v43 = vpop.permute.xlu1 %268 }
  0x9b   :  { %v281_v44 = vpop.permute.xlu0 %280  ;;  %v314_v61 = vadd.f32 %v269_v43, %v218_v30 }
  0x9c   :  { %v320_v22 = vadd.f32 %v281_v44, %v565_v27 }
  0x9e   :  { %v287_v46 = vpop.permute.xlu1 %286 }
  0x9f   :  { %v323_v25 = vadd.f32 %v287_v46, %v568_v32 }
  0xa1   :  { %v285_v47 = vpop.permute.xlu0 %284 }
  0xa2   :  { %v291_v48 = vpop.permute.xlu1 %290  ;;  %v322_v26 = vadd.f32 %v285_v47, %v571_v63 }
  0xa3   :  { %v325_v30 = vadd.f32 %v291_v48, %v574_v45 }
  0xa5   :  { %v289_v50 = vpop.permute.xlu0 %288 }
  0xa6   :  { %v295_v51 = vpop.permute.xlu1 %294  ;;  %v324_v31 = vadd.f32 %v289_v50, %v577_v13 }
  0xa7   :  { %v327_v27 = vadd.f32 %v295_v51, %v580_v21 }
  0xa9   :  { %v293_v52 = vpop.permute.xlu0 %292 }
  0xaa   :  { %v347_v54 = vpop.permute.xlu1 %346  ;;  %v326_v45 = vadd.f32 %v293_v52, %v583_v4 }
  0xab   :  { %v393_v56 = vadd.f32 %v347_v54, %v313_v53 }
  0xad   :  { %v345_v57 = vpop.permute.xlu0 %344  ;;  %411 = vst.msk [vmem:[%s660_s1 + $0x8] sm:$0x3f] %vm410_vm2, %v393_v56 }
  0xae   :  { %v392_v59 = vadd.f32 %v345_v57, %v312_v55  ;;  %v351_v60 = vpop.permute.xlu1 %350 }
  0xaf   :  { %v395_v62 = vadd.f32 %v351_v60, %v315_v58 }
  0xb0   :  { %409 = vst.msk [vmem:[%s660_s1] sm:$0xff] %vm408_vm3, %v392_v59 }
  0xb1   :  { %v349_v0 = vpop.permute.xlu0 %348  ;;  %413 = vst.msk [vmem:[%s660_s1 + $0x18] sm:$0x3f] %vm410_vm2, %v395_v62 }
  0xb2   :  { %v394_v2 = vadd.f32 %v349_v0, %v314_v61  ;;  %v355_v5 = vpop.permute.xlu1 %354 }
  0xb3   :  { %v397_v7 = vadd.f32 %v355_v5, %v317_v1 }
  0xb4   :  { %412 = vst.msk [vmem:[%s660_s1 + $0x10] sm:$0xff] %vm408_vm3, %v394_v2 }
  0xb5   :  { %v353_v8 = vpop.permute.xlu0 %352  ;;  %415 = vst.msk [vmem:[%s660_s1 + $0x28] sm:$0x3f] %vm410_vm2, %v397_v7 }
  0xb6   :  { %v396_v12 = vadd.f32 %v353_v8, %v316_v6  ;;  %v359_v14 = vpop.permute.xlu1 %358 }
  0xb7   :  { %v399_v16 = vadd.f32 %v359_v14, %v319_v11 }
  0xb8   :  { %414 = vst.msk [vmem:[%s660_s1 + $0x20] sm:$0xff] %vm408_vm3, %v396_v12 }
  0xb9   :  { %v357_v17 = vpop.permute.xlu0 %356  ;;  %417 = vst.msk [vmem:[%s660_s1 + $0x38] sm:$0x3f] %vm410_vm2, %v399_v16 }
  0xba   :  { %v398_v19 = vadd.f32 %v357_v17, %v318_v15  ;;  %v363_v20 = vpop.permute.xlu1 %362 }
  0xbb   :  { %v401_v23 = vadd.f32 %v363_v20, %v321_v18 }
  0xbc   :  { %416 = vst.msk [vmem:[%s660_s1 + $0x30] sm:$0xff] %vm408_vm3, %v398_v19 }
  0xbd   :  { %v361_v24 = vpop.permute.xlu0 %360  ;;  %419 = vst.msk [vmem:[%s660_s1 + $0x48] sm:$0x3f] %vm410_vm2, %v401_v23 }
  0xbe   :  { %v400_v3 = vadd.f32 %v361_v24, %v320_v22  ;;  %v367_v10 = vpop.permute.xlu1 %366 }
  0xbf   :  { %v403_v28 = vadd.f32 %v367_v10, %v323_v25 }
  0xc0   :  { %418 = vst.msk [vmem:[%s660_s1 + $0x40] sm:$0xff] %vm408_vm3, %v400_v3 }
  0xc1   :  { %v365_v29 = vpop.permute.xlu0 %364  ;;  %421 = vst.msk [vmem:[%s660_s1 + $0x58] sm:$0x3f] %vm410_vm2, %v403_v28 }
  0xc2   :  { %v402_v33 = vadd.f32 %v365_v29, %v322_v26  ;;  %v371_v34 = vpop.permute.xlu1 %370 }
  0xc3   :  { %v405_v35 = vadd.f32 %v371_v34, %v325_v30 }
  0xc4   :  { %420 = vst.msk [vmem:[%s660_s1 + $0x50] sm:$0xff] %vm408_vm3, %v402_v33 }
  0xc5   :  { %v369_v49 = vpop.permute.xlu0 %368  ;;  %423 = vst.msk [vmem:[%s660_s1 + $0x68] sm:$0x3f] %vm410_vm2, %v405_v35 }
  0xc6   :  { %v404_v32 = vadd.f32 %v369_v49, %v324_v31  ;;  %v375_v63 = vpop.permute.xlu1 %374 }
  0xc7   :  { %v407_v13 = vadd.f32 %v375_v63, %v327_v27 }
  0xc8   :  { %422 = vst.msk [vmem:[%s660_s1 + $0x60] sm:$0xff] %vm408_vm3, %v404_v32 }
  0xc9   :  { %v373_v9 = vpop.permute.xlu0 %372  ;;  %425 = vst.msk [vmem:[%s660_s1 + $0x78] sm:$0x3f] %vm410_vm2, %v407_v13 }
  0xca   :  { %v406_v21 = vadd.f32 %v373_v9, %v326_v45 }
  0xcc   :  { %424 = vst.msk [vmem:[%s660_s1 + $0x70] sm:$0xff] %vm408_vm3, %v406_v21 }
  0xcd   :  { %430 = vsyncpa [#allocation3], 1 }

</bundles_post_ra>
